<compile_context>
chip_gen: v5e
topology: v5e:2x2
jax: 0.10.0
libtpu: 0.0.40
codegen_flags: <defaults>
</compile_context>

<pallas_src>
import jax
import jax.numpy as jnp
from jax.experimental import pallas as pl
from jax.experimental.pallas import tpu as pltpu

LANES = 128                              # vreg lane width on all TPU generations
_MAX_LANE_WIDTH = 1024                   # widest lane-dense view we try
_TARGET_BLOCK_BYTES = 2 * 1024 * 1024    # ~2 MiB per block (see header comment)


def _relu_kernel(x_ref, o_ref):
    # Elementwise max(x, 0) on the VPU over the whole VMEM tile.
    x = x_ref[...]
    o_ref[...] = jnp.maximum(x, jnp.zeros_like(x))


def _round_up(a: int, m: int) -> int:
    return ((a + m - 1) // m) * m


def relu_pallas(x: jax.Array) -> jax.Array:
    """ReLU over an arbitrarily-shaped array via a Pallas TPU kernel."""
    orig_shape = x.shape
    dtype = x.dtype
    n = x.size
    if n == 0:
        return x

    itemsize = jnp.dtype(dtype).itemsize
    # Sublane packing: 8 rows/vreg for 4-byte dtypes, 16 for 2-byte, 32 for 1-byte.
    sublanes = max(8, 32 // max(itemsize, 1))

    x_flat = x.reshape(-1)
    n_main = (n // LANES) * LANES  # lane-aligned prefix handled by the kernel

    if n_main == 0:
        # Degenerate (<128-element) input: not worth a kernel launch.
        return jnp.maximum(x, jnp.zeros((), dtype=dtype))

    # Widest lane-dense view that divides the lane-aligned prefix.
    lane_w = LANES
    w = _MAX_LANE_WIDTH
    while w > LANES:
        if n_main % w == 0:
            lane_w = w
            break
        w //= 2

    rows = n_main // lane_w

    # Large block: ~2 MiB, multiple of sublane packing; split into >= 2 grid
    # steps when the input is big enough so megacore / v7x's 2 TCs stay busy.
    block_rows = max(
        sublanes,
        (_TARGET_BLOCK_BYTES // (lane_w * itemsize)) // sublanes * sublanes,
    )
    if rows > sublanes:
        block_rows = min(block_rows, _round_up(pl.cdiv(rows, 2), sublanes))
    if rows < sublanes:
        # Second-to-last block dim must be a multiple of 8 or the full extent.
        block_rows = rows
    else:
        block_rows = min(block_rows, _round_up(rows, sublanes))

    grid = (pl.cdiv(rows, block_rows),)

    x2d = (x_flat if n_main == n else x_flat[:n_main]).reshape(rows, lane_w)

    out2d = pl.pallas_call(
        _relu_kernel,
        out_shape=jax.ShapeDtypeStruct((rows, lane_w), dtype),
        grid_spec=pltpu.PrefetchScalarGridSpec(
            num_scalar_prefetch=0,
            grid=grid,
            in_specs=[pl.BlockSpec((block_rows, lane_w), lambda i: (i, 0))],
            out_specs=pl.BlockSpec((block_rows, lane_w), lambda i: (i, 0)),
        ),
        compiler_params=pltpu.CompilerParams(
            dimension_semantics=("parallel",),
        ),
    )(x2d)

    out_flat = out2d.reshape(-1)
    if n_main != n:
        # Sub-128-element ragged tail: plain VPU max instead of padding/slicing
        # full-array copies around the pallas_call.
        tail = jnp.maximum(x_flat[n_main:], jnp.zeros((), dtype=dtype))
        out_flat = jnp.concatenate([out_flat, tail])
    return out_flat.reshape(orig_shape)


if __name__ == "__main__":
    key = jax.random.PRNGKey(0)
    # Small NCHW input consistent with a segnet feature map: (batch=2, C=4, H=16, W=16)
    x = jax.random.normal(key, (2, 4, 16, 16), dtype=jnp.float32)

    y = relu_pallas(x)
    y = jax.block_until_ready(y)

    # Correctness check against plain JAX ReLU.
    y_ref = jnp.maximum(x, 0.0)
    assert y.shape == x.shape and y.dtype == x.dtype
    assert bool(jnp.all(y == y_ref)), "ReLU mismatch vs reference"

    print("KERNEL_OK")
</pallas_src>

<mosaic_0001>
module attributes {stable_mosaic.version = 11 : i64} {
  func.func @_relu_kernel(%arg0: i32, %arg1: memref<2x1024xf32, #tpu.memory_space<vmem>>, %arg2: memref<2x1024xf32, #tpu.memory_space<vmem>>) attributes {dimension_semantics = [#tpu.dimension_semantics<parallel>], iteration_bounds = array<i64: 1>, scalar_prefetch = 0 : i64, scratch_operands = 0 : i64, tpu.core_type = #tpu.core_type<tc>, window_params = [{transform_indices = @transform_0, window_bounds = array<i64: 2, 1024>}, {transform_indices = @transform_1, window_bounds = array<i64: 2, 1024>}]} {
    %c0 = arith.constant 0 : index
    %c0_0 = arith.constant 0 : index
    %0 = vector.load %arg1[%c0, %c0_0] : memref<2x1024xf32, #tpu.memory_space<vmem>>, vector<2x1024xf32>
    %cst = arith.constant 0.000000e+00 : f32
    %1 = vector.broadcast %cst : f32 to vector<2x1024xf32>
    %2 = arith.maximumf %0, %1 : vector<2x1024xf32>
    %c0_1 = arith.constant 0 : index
    %c0_2 = arith.constant 0 : index
    %3 = vector.load %arg2[%c0_1, %c0_2] : memref<2x1024xf32, #tpu.memory_space<vmem>>, vector<2x1024xf32>
    tpu.vector_store %arg2[%c0_1, %c0_2], %2 {strides = array<i32>} : memref<2x1024xf32, #tpu.memory_space<vmem>>, vector<2x1024xf32>,
    return
  }
  func.func @transform_0(%arg0: i32) -> (i32, i32) {
    %c0_i32 = arith.constant 0 : i32
    %c0_i32_0 = arith.constant 0 : i32
    return %arg0, %c0_i32 : i32, i32
  }
  func.func @transform_1(%arg0: i32) -> (i32, i32) {
    %c0_i32 = arith.constant 0 : i32
    %c0_i32_0 = arith.constant 0 : i32
    return %arg0, %c0_i32 : i32, i32
  }
}

</mosaic_0001>

<bundles_post_ra>
// kernel: tpu_custom_call.1
= control target key start
LH: loop header
LB: loop body
LE: loop exit
PB: predicated region body
PF: predicated region fallthrough
CT: control target
= control target key end

     0   :  { %6 = vsyncpa [#allocation3], 0  ;;  %s118_s0 = inlined_call_operand.hbm [shape: f32[2,1024], index: 0, kind: input, shape index: {}]   ;;  %s119_s1 = inlined_call_operand.hbm [shape: f32[2,1024], index: 1, kind: output, shape index: {}]  }
   0x1   :  { %7 = vsyncpa [#allocation4], 0  ;;  %s13_s8 = sshll.u32 %s118_s0, 4  ;;  %s100_s9 = smov [#allocation2]   ;;  %s14_s8 = int_to_ptr.hbm [resolvable:$true] %s13_s8 }
   0x2   :  { %s15_s10 = sshll.u32 %s100_s9, 4  ;;  %s16_s10 = int_to_ptr.vmem [resolvable:$true] %s15_s10 }
   0x3   :  { %18 = dma.hbm_to_vmem [thread:$0]  %s14_s8, 256, %s16_s10, [#allocation3]  }
   0x4   :  { %96 = dma.done.wait [#allocation3], 256  }
   0x5   :  { %97 = vsyncadd [#allocation3], 4294967040  ;;  %s101_s11 = smov [#allocation5]   ;;  %s36_s15 = sshll.u32 %s119_s1, 4  ;;  %v23_v0 = vld [vmem:[#allocation2] sm:$0xff]  ;;  %v24_v1 = vld [vmem:[#allocation2 + $0x8] sm:$0xff]  ;;  %s37_s15 = int_to_ptr.hbm [resolvable:$true] %s36_s15 }
   0x6   :  { %s34_s12 = sshll.u32 %s101_s11, 4  ;;  %v25_v2 = vmax.f32 %v23_v0, 0.0  ;;  %v26_v3 = vmax.f32 %v24_v1, 0.0  ;;  %s35_s12 = int_to_ptr.vmem [resolvable:$true] %s34_s12 }
   0x8   :  { %27 = vst [vmem:[#allocation5] sm:$0xff] %v25_v2 }
   0x9   :  { %28 = vst [vmem:[#allocation5 + $0x8] sm:$0xff] %v26_v3 }
   0xa   :  { %39 = dma.vmem_to_hbm [thread:$0]  %s35_s12, 256, %s37_s15, [#allocation4]  }
   0xb   :  { %98 = dma.done.wait [#allocation4], 256  }
   0xc   :  { %99 = vsyncadd [#allocation4], 4294967040 }
   0xd   :  { %44 = vsyncpa [#allocation3], 1 }
   0xe   :  { %45 = vsyncpa [#allocation4], 1 }

</bundles_post_ra>
